<compile_context>
chip_gen: v7x
topology: tpu7x:2x2x1
jax: 0.10.0
libtpu: 0.0.40
codegen_flags: <defaults>
</compile_context>

<pallas_src>
import jax
import jax.numpy as jnp
from jax.experimental import pallas as pl
from jax.experimental.pallas import tpu as pltpu

A_PAD = 128            # lane-dense padded action dimension
NEG_BIG = -1e30        # padding bias -> padded logits exp() to exactly 0.0


def _round_up(x, m):
    return ((x + m - 1) // m) * m


def _actor_kernel(x_ref, w1_ref, b1_ref, w2_ref, b2_ref, w3_ref, b3_ref,
                  probs_ref):
    """Fused 3-layer MLP + softmax on a (tile_b, D) state tile (all VMEM)."""
    x = x_ref[...]

    # Linear(input_dims, 64) + ReLU
    h1 = jnp.dot(x, w1_ref[...], preferred_element_type=jnp.float32)
    h1 = jnp.maximum(h1 + b1_ref[...], 0.0)

    # Linear(64, 64) + ReLU
    h2 = jnp.dot(h1, w2_ref[...], preferred_element_type=jnp.float32)
    h2 = jnp.maximum(h2 + b2_ref[...], 0.0)

    # Linear(64, A_PAD) — padded columns get logit = NEG_BIG via the bias.
    logits = jnp.dot(h2, w3_ref[...],
                     preferred_element_type=jnp.float32) + b3_ref[...]

    # Numerically stable softmax over the full 128-lane row.  Padded lanes
    # contribute exp(NEG_BIG - m) == 0 to the denominator.
    m = jnp.max(logits, axis=-1, keepdims=True)
    e = jnp.exp(logits - m)
    denom = jnp.sum(e, axis=-1, keepdims=True)

    # Approx reciprocal on the EUP + one Newton-Raphson refinement step.
    r = pl.reciprocal(denom, approx=True)
    r = r * (2.0 - denom * r)

    probs_ref[...] = (e * r).astype(probs_ref.dtype)


def _choose_tile_b(batch, desired=2048):
    """Big tiles to amortize per-step overhead, but keep >=2 grid steps when
    possible so both v7x TensorCores get work (no-op on single-TC v5e/v6e)."""
    half = _round_up(max((batch + 1) // 2, 1), 8)
    return max(8, min(desired, half))


def actor_forward(state, kernel_params, *, out_dtype=jnp.bfloat16,
                  desired_tile_b=2048):
    """ActorNetwork forward pass.

    Returns lane-padded categorical probs of shape (B, A_PAD).  Columns
    >= n_actions are exactly 0.0, so jax.random.categorical on
    jnp.log(probs) (or argmax) over the padded layout is unaffected.
    """
    w1, b1, w2, b2, w3p, b3p = kernel_params      # w3p/b3p already lane-padded
    B, D = state.shape
    a_pad = w3p.shape[1]

    tile_b = _choose_tile_b(B, desired_tile_b)
    grid = (pl.cdiv(B, tile_b),)

    def full_spec(arr):
        # Constant block index -> block stays resident across the batch grid.
        return pl.BlockSpec(arr.shape, lambda i: (0, 0))

    return pl.pallas_call(
        _actor_kernel,
        out_shape=jax.ShapeDtypeStruct((B, a_pad), out_dtype),
        grid=grid,
        in_specs=[
            pl.BlockSpec((tile_b, D), lambda i: (i, 0)),   # state: batch-tiled
            full_spec(w1), full_spec(b1),
            full_spec(w2), full_spec(b2),
            full_spec(w3p), full_spec(b3p),
        ],
        out_specs=pl.BlockSpec((tile_b, a_pad), lambda i: (i, 0)),
        compiler_params=pltpu.CompilerParams(
            dimension_semantics=("parallel",)),   # shard batch over v7x TCs
    )(state, w1, b1, w2, b2, w3p, b3p)


def init_params(key, input_dims, n_actions):
    """Deterministic init mirroring nn.Linear default (U(-1/sqrt(fan_in), ..))."""

    def linear(key, fan_in, fan_out):
        kw, kb = jax.random.split(key)
        bound = 1.0 / jnp.sqrt(float(fan_in))
        # stored as (in, out) so the kernel computes x @ W
        w = jax.random.uniform(kw, (fan_in, fan_out), jnp.float32,
                               minval=-bound, maxval=bound)
        b = jax.random.uniform(kb, (1, fan_out), jnp.float32,
                               minval=-bound, maxval=bound)
        return w, b

    k1, k2, k3 = jax.random.split(key, 3)
    w1, b1 = linear(k1, input_dims, 64)
    w2, b2 = linear(k2, 64, 64)
    w3, b3 = linear(k3, 64, n_actions)
    return (w1, b1, w2, b2, w3, b3)


def pad_params_for_kernel(params, a_pad=A_PAD):
    """Pads the last layer to a lane-dense (…, 128) layout for the kernel.

    Zero weight columns + NEG_BIG bias in the padding drive the padded logits
    so far negative they vanish (exactly 0.0) in the softmax.
    """
    w1, b1, w2, b2, w3, b3 = params
    n_actions = w3.shape[1]
    pad = a_pad - n_actions
    w3p = jnp.pad(w3, ((0, 0), (0, pad)))
    b3p = jnp.pad(b3, ((0, 0), (0, pad)), constant_values=NEG_BIG)
    return (w1, b1, w2, b2, w3p, b3p)


def actor_forward_ref(state, params):
    """Plain-JAX reference (unpadded) for correctness checking."""
    w1, b1, w2, b2, w3, b3 = params
    hi = jax.lax.Precision.HIGHEST
    h1 = jnp.maximum(jnp.dot(state, w1, precision=hi) + b1, 0.0)
    h2 = jnp.maximum(jnp.dot(h1, w2, precision=hi) + b2, 0.0)
    logits = jnp.dot(h2, w3, precision=hi) + b3
    return jax.nn.softmax(logits, axis=-1)


if __name__ == "__main__":
    key = jax.random.PRNGKey(0)
    k_params, k_small, k_med = jax.random.split(key, 3)

    input_dims = 32   # observation dim
    n_actions = 6

    params = init_params(k_params, input_dims, n_actions)
    kernel_params = pad_params_for_kernel(params)

    # --- small batch, f32 output, tight tolerance (single grid step) ---
    b_small = 8
    s_small = jax.random.normal(k_small, (b_small, input_dims), jnp.float32)
    p_small = jax.block_until_ready(
        actor_forward(s_small, kernel_params, out_dtype=jnp.float32))
    ref_small = actor_forward_ref(s_small, params)
    assert p_small.shape == (b_small, A_PAD)
    assert jnp.allclose(p_small[:, :n_actions], ref_small, atol=1e-5, rtol=1e-4)
    assert jnp.allclose(jnp.sum(p_small, axis=-1), 1.0, atol=1e-5)
    assert float(jnp.max(jnp.abs(p_small[:, n_actions:]))) == 0.0  # padded lanes

    # --- rollout-sized, non-tile-multiple batch, bf16 output -------------
    # Exercises the cdiv grid (2 steps, partial tail block) and the
    # halved-output-traffic production path.
    b_med = 1000
    s_med = jax.random.normal(k_med, (b_med, input_dims), jnp.float32)
    p_med = jax.block_until_ready(
        actor_forward(s_med, kernel_params, out_dtype=jnp.bfloat16))
    ref_med = actor_forward_ref(s_med, params)
    assert p_med.shape == (b_med, A_PAD)
    p_med_f32 = p_med.astype(jnp.float32)
    assert jnp.allclose(p_med_f32[:, :n_actions], ref_med, atol=5e-3)
    assert jnp.allclose(jnp.sum(p_med_f32, axis=-1), 1.0, atol=2e-2)
    assert float(jnp.max(jnp.abs(p_med_f32[:, n_actions:]))) == 0.0

    # TODO(synk): Categorical sampling / log_prob left to host-side JAX
    # (jax.random.categorical on jnp.log(probs)) — not a kernel hot path.
    print("KERNEL_OK")
</pallas_src>

<mosaic_0001>
module attributes {stable_mosaic.version = 11 : i64} {
  func.func @_actor_kernel(%arg0: i32, %arg1: memref<8x32xf32, #tpu.memory_space<vmem>>, %arg2: memref<32x64xf32, #tpu.memory_space<vmem>>, %arg3: memref<1x64xf32, #tpu.memory_space<vmem>>, %arg4: memref<64x64xf32, #tpu.memory_space<vmem>>, %arg5: memref<1x64xf32, #tpu.memory_space<vmem>>, %arg6: memref<64x128xf32, #tpu.memory_space<vmem>>, %arg7: memref<1x128xf32, #tpu.memory_space<vmem>>, %arg8: memref<8x128xf32, #tpu.memory_space<vmem>>) attributes {dimension_semantics = [#tpu.dimension_semantics<parallel>], iteration_bounds = array<i64: 1>, scalar_prefetch = 0 : i64, scratch_operands = 0 : i64, tpu.core_type = #tpu.core_type<tc>, window_params = [{transform_indices = @transform_0, window_bounds = array<i64: 8, 32>}, {pipeline_mode = #tpu.pipeline_mode<synchronous>, transform_indices = @transform_1, window_bounds = array<i64: 32, 64>}, {pipeline_mode = #tpu.pipeline_mode<synchronous>, transform_indices = @transform_2, window_bounds = array<i64: 1, 64>}, {pipeline_mode = #tpu.pipeline_mode<synchronous>, transform_indices = @transform_3, window_bounds = array<i64: 64, 64>}, {pipeline_mode = #tpu.pipeline_mode<synchronous>, transform_indices = @transform_4, window_bounds = array<i64: 1, 64>}, {pipeline_mode = #tpu.pipeline_mode<synchronous>, transform_indices = @transform_5, window_bounds = array<i64: 64, 128>}, {pipeline_mode = #tpu.pipeline_mode<synchronous>, transform_indices = @transform_6, window_bounds = array<i64: 1, 128>}, {transform_indices = @transform_7, window_bounds = array<i64: 8, 128>}]} {
    %c0 = arith.constant 0 : index
    %c0_0 = arith.constant 0 : index
    %0 = vector.load %arg1[%c0, %c0_0] : memref<8x32xf32, #tpu.memory_space<vmem>>, vector<8x32xf32>
    %c0_1 = arith.constant 0 : index
    %c0_2 = arith.constant 0 : index
    %1 = vector.load %arg2[%c0_1, %c0_2] : memref<32x64xf32, #tpu.memory_space<vmem>>, vector<32x64xf32>
    %cst = arith.constant dense<0.000000e+00> : vector<8x64xf32>
    %2 = tpu.matmul %0, %1, %cst {dimension_numbers = #tpu.dot_dimension_numbers<[1], [0], [0], [1], [0, 0, 1, 1], [], []>} : vector<8x32xf32>, vector<32x64xf32>, vector<8x64xf32> -> vector<8x64xf32>
    %c0_3 = arith.constant 0 : index
    %c0_4 = arith.constant 0 : index
    %3 = vector.load %arg3[%c0_3, %c0_4] : memref<1x64xf32, #tpu.memory_space<vmem>>, vector<1x64xf32>
    %4 = vector.broadcast %3 : vector<1x64xf32> to vector<8x64xf32>
    %5 = arith.addf %2, %4 : vector<8x64xf32>
    %cst_5 = arith.constant 0.000000e+00 : f32
    %6 = vector.broadcast %cst_5 : f32 to vector<8x64xf32>
    %7 = arith.maximumf %5, %6 : vector<8x64xf32>
    %c0_6 = arith.constant 0 : index
    %c0_7 = arith.constant 0 : index
    %8 = vector.load %arg4[%c0_6, %c0_7] : memref<64x64xf32, #tpu.memory_space<vmem>>, vector<64x64xf32>
    %cst_8 = arith.constant dense<0.000000e+00> : vector<8x64xf32>
    %9 = tpu.matmul %7, %8, %cst_8 {dimension_numbers = #tpu.dot_dimension_numbers<[1], [0], [0], [1], [0, 0, 1, 1], [], []>} : vector<8x64xf32>, vector<64x64xf32>, vector<8x64xf32> -> vector<8x64xf32>
    %c0_9 = arith.constant 0 : index
    %c0_10 = arith.constant 0 : index
    %10 = vector.load %arg5[%c0_9, %c0_10] : memref<1x64xf32, #tpu.memory_space<vmem>>, vector<1x64xf32>
    %11 = vector.broadcast %10 : vector<1x64xf32> to vector<8x64xf32>
    %12 = arith.addf %9, %11 : vector<8x64xf32>
    %cst_11 = arith.constant 0.000000e+00 : f32
    %13 = vector.broadcast %cst_11 : f32 to vector<8x64xf32>
    %14 = arith.maximumf %12, %13 : vector<8x64xf32>
    %c0_12 = arith.constant 0 : index
    %c0_13 = arith.constant 0 : index
    %15 = vector.load %arg6[%c0_12, %c0_13] : memref<64x128xf32, #tpu.memory_space<vmem>>, vector<64x128xf32>
    %cst_14 = arith.constant dense<0.000000e+00> : vector<8x128xf32>
    %16 = tpu.matmul %14, %15, %cst_14 {dimension_numbers = #tpu.dot_dimension_numbers<[1], [0], [0], [1], [0, 0, 1, 1], [], []>} : vector<8x64xf32>, vector<64x128xf32>, vector<8x128xf32> -> vector<8x128xf32>
    %c0_15 = arith.constant 0 : index
    %c0_16 = arith.constant 0 : index
    %17 = vector.load %arg7[%c0_15, %c0_16] : memref<1x128xf32, #tpu.memory_space<vmem>>, vector<1x128xf32>
    %18 = vector.broadcast %17 : vector<1x128xf32> to vector<8x128xf32>
    %19 = arith.addf %16, %18 : vector<8x128xf32>
    %cst_17 = arith.constant dense<0xFF800000> : vector<8xf32>
    %20 = vector.multi_reduction <maximumf>, %19, %cst_17 [1] : vector<8x128xf32> to vector<8xf32>
    %21 = vector.shape_cast %20 : vector<8xf32> to vector<8x1xf32>
    %22 = vector.broadcast %21 : vector<8x1xf32> to vector<8x128xf32>
    %23 = arith.subf %19, %22 : vector<8x128xf32>
    %24 = math.exp %23 : vector<8x128xf32>
    %cst_18 = arith.constant dense<0.000000e+00> : vector<8xf32>
    %25 = vector.multi_reduction <add>, %24, %cst_18 [1] : vector<8x128xf32> to vector<8xf32>
    %26 = vector.shape_cast %25 : vector<8xf32> to vector<8x1xf32>
    %27 = tpu.reciprocal %26 {approx = true} : vector<8x1xf32> -> vector<8x1xf32>
    %28 = arith.mulf %26, %27 : vector<8x1xf32>
    %cst_19 = arith.constant 2.000000e+00 : f32
    %29 = vector.broadcast %cst_19 : f32 to vector<8x1xf32>
    %30 = arith.subf %29, %28 : vector<8x1xf32>
    %31 = arith.mulf %27, %30 : vector<8x1xf32>
    %32 = vector.broadcast %31 : vector<8x1xf32> to vector<8x128xf32>
    %33 = arith.mulf %24, %32 : vector<8x128xf32>
    %c0_20 = arith.constant 0 : index
    %c0_21 = arith.constant 0 : index
    %34 = vector.load %arg8[%c0_20, %c0_21] : memref<8x128xf32, #tpu.memory_space<vmem>>, vector<8x128xf32>
    tpu.vector_store %arg8[%c0_20, %c0_21], %33 {strides = array<i32>} : memref<8x128xf32, #tpu.memory_space<vmem>>, vector<8x128xf32>,
    return
  }
  func.func @transform_0(%arg0: i32) -> (i32, i32) {
    %c0_i32 = arith.constant 0 : i32
    %c0_i32_0 = arith.constant 0 : i32
    return %arg0, %c0_i32 : i32, i32
  }
  func.func @transform_1(%arg0: i32) -> (i32, i32) {
    %c0_i32 = arith.constant 0 : i32
    %c0_i32_0 = arith.constant 0 : i32
    %c0_i32_1 = arith.constant 0 : i32
    return %c0_i32, %c0_i32_0 : i32, i32
  }
  func.func @transform_2(%arg0: i32) -> (i32, i32) {
    %c0_i32 = arith.constant 0 : i32
    %c0_i32_0 = arith.constant 0 : i32
    %c0_i32_1 = arith.constant 0 : i32
    return %c0_i32, %c0_i32_0 : i32, i32
  }
  func.func @transform_3(%arg0: i32) -> (i32, i32) {
    %c0_i32 = arith.constant 0 : i32
    %c0_i32_0 = arith.constant 0 : i32
    %c0_i32_1 = arith.constant 0 : i32
    return %c0_i32, %c0_i32_0 : i32, i32
  }
  func.func @transform_4(%arg0: i32) -> (i32, i32) {
    %c0_i32 = arith.constant 0 : i32
    %c0_i32_0 = arith.constant 0 : i32
    %c0_i32_1 = arith.constant 0 : i32
    return %c0_i32, %c0_i32_0 : i32, i32
  }
  func.func @transform_5(%arg0: i32) -> (i32, i32) {
    %c0_i32 = arith.constant 0 : i32
    %c0_i32_0 = arith.constant 0 : i32
    %c0_i32_1 = arith.constant 0 : i32
    return %c0_i32, %c0_i32_0 : i32, i32
  }
  func.func @transform_6(%arg0: i32) -> (i32, i32) {
    %c0_i32 = arith.constant 0 : i32
    %c0_i32_0 = arith.constant 0 : i32
    %c0_i32_1 = arith.constant 0 : i32
    return %c0_i32, %c0_i32_0 : i32, i32
  }
  func.func @transform_7(%arg0: i32) -> (i32, i32) {
    %c0_i32 = arith.constant 0 : i32
    %c0_i32_0 = arith.constant 0 : i32
    return %arg0, %c0_i32 : i32, i32
  }
}

</mosaic_0001>

<bundles_post_ra>
// kernel: tpu_custom_call.1
= control target key start
LH: loop header
LB: loop body
LE: loop exit
PB: predicated region body
PF: predicated region fallthrough
CT: control target
= control target key end

     0   :  { %12 = vsyncpa [#allocation3], 0  ;;  %s746_s0 = inlined_call_operand.hbm [shape: f32[8,32], index: 0, kind: input, shape index: {}]   ;;  %s747_s1 = inlined_call_operand.hbm [shape: f32[32,64], index: 1, kind: input, shape index: {}]   ;;  %s748_s2 = inlined_call_operand.vmem [shape: f32[1,64], index: 2, kind: input, shape index: {}]   ;;  %s749_s3 = inlined_call_operand.hbm [shape: f32[64,64], index: 3, kind: input, shape index: {}]   ;;  %s750_s4 = inlined_call_operand.vmem [shape: f32[1,64], index: 4, kind: input, shape index: {}]   ;;  %s751_s5 = inlined_call_operand.hbm [shape: f32[64,128], index: 5, kind: input, shape index: {}]   ;;  %s752_s6 = inlined_call_operand.vmem [shape: f32[1,128], index: 6, kind: input, shape index: {}]   ;;  %s753_s7 = inlined_call_operand.hbm [shape: f32[8,128], index: 7, kind: output, shape index: {}]  }
   0x1   :  { %13 = vsyncpa [#allocation6], 0 }
   0x2   :  { %14 = vsyncpa [#allocation9], 0 }
   0x3   :  { %15 = vsyncpa [#allocation4], 0  ;;  %s615_s24 = smov [#allocation5]   ;;  %s497_s28 = scalar_lea.hbm %s747_s1, 512 }
   0x4   :  { %s31_s25 = sshll.u32 %s615_s24, 4  ;;  %p498_p0 = scmp.ne.s32.totalorder %s747_s1, %s497_s28  ;;  %s32_s25 = int_to_ptr.vmem [resolvable:$true] %s31_s25 }
   0x5   :  { %p501_p1 = scmp.lt.u32.totalorder %s497_s28, %s747_s1 }
   0x7   :  { %p503_p2 = pnand %p501_p1, %p498_p0 }
   0x9   :  { %506 = shalt.err (!%p503_p2)
}
   0xa   :  { %s507_s10 = scalar_lea.vmem %s32_s25, 512  ;;  %p512_p4 = scmp.lt.s32.totalorder %s32_s25, %s32_s25 }
   0xb   :  { %p508_p3 = scmp.ne.s32.totalorder %s32_s25, %s507_s10  ;;  %p513_p5 = scmp.lt.s32.totalorder %s507_s10, %s507_s10 }
   0xd   :  { %p514_p6 = por %p513_p5, %p512_p4 }
   0xf   :  { %p515_p7 = pnand %p514_p6, %p508_p3 }
  0x11   :  { %518 = shalt.err (!%p515_p7)
}
  0x12   :  { %s616_s11 = smov 128   ;;  %s617_s12 = smov 8  }
  0x13   :  { %37 = dma.hbm_to_vmem [thread:$0]  %s747_s1, 512, %s32_s25, [#allocation6], %s616_s11, %s616_s11, %s617_s12  }
  0x14   :  { %s618_s15 = smov [#allocation2]   ;;  %s619_s17 = smov [#allocation7]  }
  0x15   :  { %s22_s16 = sshll.u32 %s618_s15, 4  ;;  %s45_s18 = sshll.u32 %s619_s17, 4  ;;  %s23_s16 = int_to_ptr.vmem [resolvable:$true] %s22_s16  ;;  %s46_s18 = int_to_ptr.vmem [resolvable:$true] %s45_s18 }
  0x16   :  { %s519_s21 = scalar_lea.hbm %s746_s0, 128 }
  0x17   :  { %p520_p8 = scmp.ne.s32.totalorder %s746_s0, %s519_s21  ;;  %p523_p9 = scmp.lt.u32.totalorder %s519_s21, %s746_s0 }
  0x19   :  { %p525_p10 = pnand %p523_p9, %p520_p8 }
  0x1b   :  { %528 = shalt.err (!%p525_p10)
}
  0x1c   :  { %s529_s1 = scalar_lea.vmem %s23_s16, 128  ;;  %p534_p12 = scmp.lt.s32.totalorder %s23_s16, %s23_s16 }
  0x1d   :  { %p530_p11 = scmp.ne.s32.totalorder %s23_s16, %s529_s1  ;;  %p535_p13 = scmp.lt.s32.totalorder %s529_s1, %s529_s1 }
  0x1f   :  { %p536_p0 = por %p535_p13, %p534_p12 }
  0x21   :  { %p537_p1 = pnand %p536_p0, %p530_p11 }
  0x23   :  { %540 = shalt.err (!%p537_p1)
}
  0x24   :  { %25 = dma.hbm_to_vmem [thread:$0]  %s746_s0, 128, %s23_s16, [#allocation3]  }
  0x25   :  { %s541_s30 = scalar_lea.hbm %s749_s3, 1024 }
  0x26   :  { %p542_p2 = scmp.ne.s32.totalorder %s749_s3, %s541_s30  ;;  %p545_p3 = scmp.lt.u32.totalorder %s541_s30, %s749_s3 }
  0x28   :  { %p547_p4 = pnand %p545_p3, %p542_p2 }
  0x2a   :  { %550 = shalt.err (!%p547_p4)
}
  0x2b   :  { %s551_s14 = scalar_lea.vmem %s46_s18, 1024  ;;  %p556_p6 = scmp.lt.s32.totalorder %s46_s18, %s46_s18 }
  0x2c   :  { %p552_p5 = scmp.ne.s32.totalorder %s46_s18, %s551_s14  ;;  %p557_p7 = scmp.lt.s32.totalorder %s551_s14, %s551_s14 }
  0x2e   :  { %p558_p8 = por %p557_p7, %p556_p6 }
  0x30   :  { %p559_p9 = pnand %p558_p8, %p552_p5 }
  0x32   :  { %562 = shalt.err (!%p559_p9)
}
  0x33   :  { %51 = dma.hbm_to_vmem [thread:$0]  %s749_s3, 1024, %s46_s18, [#allocation6], %s616_s11, %s616_s11, %s617_s12  }
  0x34   :  { %s620_s16 = smov [#allocation8]   ;;  %s563_s21 = scalar_lea.hbm %s751_s5, 1024 }
  0x35   :  { %s59_s17 = sshll.u32 %s620_s16, 4  ;;  %p564_p10 = scmp.ne.s32.totalorder %s751_s5, %s563_s21  ;;  %s60_s17 = int_to_ptr.vmem [resolvable:$true] %s59_s17 }
  0x36   :  { %p567_p11 = scmp.lt.u32.totalorder %s563_s21, %s751_s5 }
  0x38   :  { %p569_p12 = pnand %p567_p11, %p564_p10 }
  0x3a   :  { %572 = shalt.err (!%p569_p12)
}
  0x3b   :  { %s573_s1 = scalar_lea.vmem %s60_s17, 1024  ;;  %p578_p0 = scmp.lt.s32.totalorder %s60_s17, %s60_s17 }
  0x3c   :  { %p574_p13 = scmp.ne.s32.totalorder %s60_s17, %s573_s1  ;;  %p579_p1 = scmp.lt.s32.totalorder %s573_s1, %s573_s1 }
  0x3e   :  { %p580_p2 = por %p579_p1, %p578_p0 }
  0x40   :  { %p581_p3 = pnand %p580_p2, %p574_p13 }
  0x42   :  { %584 = shalt.err (!%p581_p3)
}
  0x43   :  { %65 = dma.hbm_to_vmem [thread:$0]  %s751_s5, 1024, %s60_s17, [#allocation9], %s616_s11, %s616_s11, %s617_s12  }
  0x44   :  { %607 = dma.done.wait [#allocation3], 128  }
  0x45   :  { %608 = vsyncadd [#allocation3], 4294967168 }
  0x46   :  { %609 = dma.done.wait [#allocation6], 1536  }
  0x47   :  { %610 = vsyncadd [#allocation6], 4294965760 }
  0x48   :  { %611 = dma.done.wait [#allocation9], 1024  }
  0x49   :  { %612 = vsyncadd [#allocation9], 4294966272  ;;  %v621_v0 = vmov 0.0|0.0   ;;  %vm622_vm0 = vmmov 0   ;;  %v623_v1 = vmov 0.0   ;;  %v81_v2 = vld [vmem:[#allocation5] sm:$0xff] }
  0x4a   :  { %453 = vmatprep.subr.bf16.mxu0 %v621_v0  ;;  %412 = vmatprep.mubr.msk.f32.mxu0 %vm622_vm0, %v623_v1  ;;  %v82_v3 = vld [vmem:[#allocation5 + $0x8] sm:$0xff]  ;;  %v83_v4 = vld [vmem:[#allocation5 + $0x10] sm:$0xff]  ;;  %v84_v6 = vld [vmem:[#allocation5 + $0x18] sm:$0xff]  ;;  %vm92_vm1 = vcmask 261120   ;;  %vm182_vm2 = vcmask 523264  }
  0x4b   :  { %459 = vmatprep.subr.bf16.mxu1 %v621_v0  ;;  %431 = vmatprep.mubr.msk.f32.mxu1 %vm622_vm0, %v623_v1  ;;  %v454_v5 = vpack.c.bf16 %v82_v3, %v81_v2  ;;  %v167_v7 = vld [vmem:[#allocation7] sm:$0xff]  ;;  %v168_v8 = vld [vmem:[#allocation7 + $0x8] sm:$0xff]  ;;  %v169_v9 = vld [vmem:[#allocation7 + $0x10] sm:$0xff]  ;;  %v457_v11 = vpack.c.bf16 %v84_v6, %v83_v4 }
  0x4c   :  { %v170_v10 = vld [vmem:[#allocation7 + $0x18] sm:$0xff]  ;;  %v460_v12 = vpack.c.bf16 %v168_v8, %v167_v7  ;;  %v171_v14 = vld [vmem:[#allocation7 + $0x20] sm:$0xff]  ;;  %v172_v15 = vld [vmem:[#allocation7 + $0x28] sm:$0xff] }
  0x4d   :  { %455 = vmatpush3.bf16.msra.mxu0 %v454_v5  ;;  %v463_v13 = vpack.c.bf16 %v170_v10, %v169_v9  ;;  %v80_v16 = vld [vmem:[#allocation2] sm:$0xff]  ;;  %v466_v17 = vpack.c.bf16 %v172_v15, %v171_v14  ;;  %v173_v18 = vld [vmem:[#allocation7 + $0x30] sm:$0xff]  ;;  %v257_v21 = vld [vmem:[#allocation8] sm:$0xff] }
  0x4e   :  { %456 = vmatprep.subr.bf16.mxu0 %v621_v0  ;;  %461 = vmatpush3.bf16.msra.mxu1 %v460_v12  ;;  %v174_v19 = vld [vmem:[#allocation7 + $0x38] sm:$0xff]  ;;  %v258_v22 = vld [vmem:[#allocation8 + $0x8] sm:$0xff]  ;;  %v259_v23 = vld [vmem:[#allocation8 + $0x10] sm:$0xff] }
  0x4f   :  { %462 = vmatprep.subr.bf16.mxu1 %v621_v0  ;;  %v469_v20 = vpack.c.bf16 %v174_v19, %v173_v18  ;;  %v472_v24 = vpack.c.bf16 %v258_v22, %v257_v21  ;;  %v260_v25 = vld [vmem:[#allocation8 + $0x18] sm:$0xff]  ;;  %v261_v27 = vld [vmem:[#allocation8 + $0x20] sm:$0xff]  ;;  %v262_v28 = vld [vmem:[#allocation8 + $0x28] sm:$0xff] }
  0x50   :  { %v475_v26 = vpack.c.bf16 %v260_v25, %v259_v23  ;;  %v478_v29 = vpack.c.bf16 %v262_v28, %v261_v27  ;;  %v375_v30 = vld [vmem:[%s748_s2] ss:$0 sm:$0xff]  ;;  %v263_v35 = vld [vmem:[#allocation8 + $0x30] sm:$0xff] }
  0x51   :  { %458 = vmatpush3.bf16.msra.mxu0 %v457_v11  ;;  %v264_v36 = vld [vmem:[#allocation8 + $0x38] sm:$0xff] }
  0x52   :  { %471 = vmatprep.subr.bf16.mxu0 %v621_v0  ;;  %464 = vmatpush3.bf16.msra.mxu1 %v463_v13  ;;  %v481_v37 = vpack.c.bf16 %v264_v36, %v263_v35  ;;  %v377_v38 = vld [vmem:[%s750_s4] ss:$0 sm:$0xff]  ;;  %s624_s4 = smov [#allocation10]  }
  0x53   :  { %465 = vmatprep.subr.bf16.mxu1 %v621_v0  ;;  %v379_v43 = vld [vmem:[%s752_s6] ss:$0 sm:$0xff]  ;;  %s364_s28 = sshll.u32 %s624_s4, 4  ;;  %s365_s28 = int_to_ptr.vmem [resolvable:$true] %s364_s28 }
  0x54   :  { %413 = vmatmul.mubr.msk.f32.vlgmr.msra.gmra.mrb[0].mxu0 %vm92_vm1, %v80_v16  ;;  %s585_s6 = scalar_lea.vmem %s365_s28, 128  ;;  %p590_p5 = scmp.lt.s32.totalorder %s365_s28, %s365_s28 }
  0x55   :  { %450 = vmatprep.mubr.msk.f32.mxu0 %vm622_vm0, %v623_v1  ;;  %473 = vmatpush3.bf16.msra.mxu0 %v472_v24  ;;  %p586_p4 = scmp.ne.s32.totalorder %s365_s28, %s585_s6  ;;  %p591_p6 = scmp.lt.s32.totalorder %s585_s6, %s585_s6 }
  0x56   :  { %467 = vmatpush3.bf16.msra.mxu1 %v466_v17  ;;  %474 = vmatprep.subr.bf16.mxu0 %v621_v0 }
  0x57   :  { %468 = vmatprep.subr.bf16.mxu1 %v621_v0  ;;  %p592_p7 = por %p591_p6, %p590_p5 }
  0x59   :  { %476 = vmatpush3.bf16.msra.mxu0 %v475_v26  ;;  %p593_p8 = pnand %p592_p7, %p586_p4 }
  0x5a   :  { %470 = vmatpush3.bf16.msra.mxu1 %v469_v20  ;;  %477 = vmatprep.subr.bf16.mxu0 %v621_v0 }
  0x5d   :  { %479 = vmatpush3.bf16.msra.mxu0 %v478_v29 }
  0x5e   :  { %480 = vmatprep.subr.bf16.mxu0 %v621_v0 }
  0x61   :  { %482 = vmatpush3.bf16.msra.mxu0 %v481_v37 }
 0x127   :  { %v162_v31 = vpop.f32.mrb[0].mxu0 }
 0x128   :  { %v163_v32 = vadd.f32 %v375_v30, %v162_v31  ;;  %v414_v33 = vpop.f32.mrb[1].mxu0 }
 0x12a   :  { %v166_v34 = vmax.f32 %v163_v32, 0.0 }
 0x12c   :  { %432 = vmatmul.mubr.msk.f32.vlgmr.msra.gmra.mrb[0].mxu1 %vm182_vm2, %v166_v34 }
 0x1ff   :  { %v252_v39 = vpop.f32.mrb[0].mxu1 }
 0x200   :  { %v253_v40 = vadd.f32 %v377_v38, %v252_v39  ;;  %v433_v41 = vpop.f32.mrb[1].mxu1 }
 0x202   :  { %v256_v42 = vmax.f32 %v253_v40, 0.0 }
 0x204   :  { %451 = vmatmul.mubr.msk.f32.vlgmr.msra.gmra.mrb[2].mxu0 %vm182_vm2, %v256_v42 }
 0x2d7   :  { %v341_v44 = vpop.f32.mrb[2].mxu0 }
 0x2d8   :  { %v342_v45 = vadd.f32 %v379_v43, %v341_v44  ;;  %v452_v46 = vpop.f32.mrb[3].mxu0 }
 0x2da   :  { %345 = vmax.xlane.f32.xlu0 %v342_v45 }
 0x367   :  { %v346_v47 = vpop.xlane.xlu0 %345 }
 0x368   :  { %v347_v48 = vsub.f32 %v342_v45, %v346_v47 }
 0x36a   :  { %v348_v49 = vmul.f32 1.442695, %v347_v48 }
 0x36c   :  { %493 = vpow2.f32 %v348_v49 }
 0x376   :  { %v494_v50 = vpop.eup %493 }
 0x377   :  { %350 = vadd.xlane.f32.xlu0 %v494_v50 }
 0x404   :  { %v351_v51 = vpop.xlane.xlu0 %350 }
 0x405   :  { %495 = vrcp.f32 %v351_v51 }
 0x40f   :  { %v496_v52 = vpop.eup %495 }
 0x410   :  { %v353_v53 = vmul.f32 %v496_v52, %v351_v51 }
 0x412   :  { %v354_v54 = vsub.f32 2.0, %v353_v53 }
 0x414   :  { %v355_v55 = vmul.f32 %v496_v52, %v354_v54 }
 0x416   :  { %v356_v56 = vmul.f32 %v494_v50, %v355_v55 }
 0x418   :  { %357 = vst [vmem:[#allocation10] sm:$0xff] %v356_v56 }
 0x419   :  { %596 = shalt.err (!%p593_p8)
}
 0x41a   :  { %s597_s8 = scalar_lea.hbm %s753_s7, 128 }
 0x41b   :  { %p598_p9 = scmp.ne.s32.totalorder %s753_s7, %s597_s8  ;;  %p601_p10 = scmp.lt.u32.totalorder %s597_s8, %s753_s7 }
 0x41d   :  { %p603_p11 = pnand %p601_p10, %p598_p9 }
 0x41f   :  { %606 = shalt.err (!%p603_p11)
}
 0x420   :  { %367 = dma.vmem_to_hbm [thread:$0]  %s365_s28, 128, %s753_s7, [#allocation4]  }
 0x421   :  { %613 = dma.done.wait [#allocation4], 128  }
 0x422   :  { %614 = vsyncadd [#allocation4], 4294967168 }
 0x423   :  { %371 = vsyncpa [#allocation3], 1 }
 0x424   :  { %372 = vsyncpa [#allocation6], 1 }
 0x425   :  { %373 = vsyncpa [#allocation9], 1 }
 0x426   :  { %374 = vsyncpa [#allocation4], 1 }

</bundles_post_ra>
